<compile_context>
chip_gen: v6e
topology: v6e:2x2x1
jax: 0.10.0
libtpu: 0.0.40
codegen_flags: <defaults>
</compile_context>

<pallas_src>
import jax
import jax.numpy as jnp
from jax.experimental import pallas as pl
from jax.experimental.pallas import tpu as pltpu


def conv_task_kernel(p_ref, w_ref, b_ref, o_ref):
    # p_ref : (1, 9*Cin, H*W) bf16  im2col patches for one batch element
    # w_ref : (Cout, 9*Cin)   bf16  3x3 weights, 1x1 adapter folded into the
    #                               center tap, BN (eval) scale folded in
    # b_ref : (Cout, 1)       f32   folded BN bias
    # o_ref : (1, Cout, H*W)  f32   NCHW-ordered (flattened spatial) output
    y = jnp.dot(w_ref[...], p_ref[0], preferred_element_type=jnp.float32)
    o_ref[0] = (y + b_ref[...]).astype(o_ref.dtype)


def conv_task_forward(x_nchw, w3_oihw, w1_oihw, gamma, beta,
                      running_mean, running_var, eps=1e-5):
    N, Cin, H, W = x_nchw.shape
    Cout = w3_oihw.shape[0]
    HW = H * W
    K = 9 * Cin

    # ---- weight folding (wrapper side, negligible) -------------------------
    # OIHW -> (Cout, kh, kw, Cin) -> (Cout, 9*Cin); feature index = tap*Cin+ci.
    w_flat = jnp.transpose(w3_oihw, (0, 2, 3, 1)).reshape(Cout, K).astype(jnp.float32)
    # Parallel 1x1 adapter == center tap (kh=1, kw=1 -> tap 4) of the 3x3 conv.
    w_flat = w_flat.at[:, 4 * Cin:5 * Cin].add(w1_oihw[:, :, 0, 0].astype(jnp.float32))
    # Fold BatchNorm (eval) scale into the weights; only the bias stays.
    scale = gamma / jnp.sqrt(running_var + eps)
    w_fold = (w_flat * scale[:, None]).astype(jnp.bfloat16)          # (Cout, 9*Cin)
    bias = (beta - running_mean * scale).reshape(Cout, 1).astype(jnp.float32)

    # ---- im2col (wrapper side): patches[n, tap*Cin+ci, h*W+w] --------------
    # Built directly from the NCHW layout, so no NCHW<->NHWC transpose is ever
    # performed and the kernel output maps back to NCHW with a free reshape.
    x_pad = jnp.pad(x_nchw.astype(jnp.float32), ((0, 0), (0, 0), (1, 1), (1, 1)))
    taps = [x_pad[:, :, kh:kh + H, kw:kw + W].reshape(N, Cin, HW)
            for kh in range(3) for kw in range(3)]
    patches = jnp.concatenate(taps, axis=1).astype(jnp.bfloat16)     # (N, 9*Cin, HW)

    out_flat = pl.pallas_call(
        conv_task_kernel,
        out_shape=jax.ShapeDtypeStruct((N, Cout, HW), jnp.float32),
        grid_spec=pltpu.PrefetchScalarGridSpec(
            num_scalar_prefetch=0,
            grid=(N,),
            in_specs=[
                pl.BlockSpec((1, K, HW), lambda b: (b, 0, 0)),
                pl.BlockSpec((Cout, K), lambda b: (0, 0)),
                pl.BlockSpec((Cout, 1), lambda b: (0, 0)),
            ],
            out_specs=pl.BlockSpec((1, Cout, HW), lambda b: (b, 0, 0)),
        ),
        compiler_params=pltpu.CompilerParams(
            dimension_semantics=("parallel",),          # megacore split on v7x
            vmem_limit_bytes=32 * 1024 * 1024,
        ),
    )(patches, w_fold, bias)

    # (N, Cout, H*W) is already NCHW-ordered; this reshape moves no data.
    return out_flat.reshape(N, Cout, H, W)


def _reference(x_nchw, w3, w1, gamma, beta, mean, var, eps=1e-5):
    dn = ("NCHW", "OIHW", "NCHW")
    y = jax.lax.conv_general_dilated(x_nchw, w3, (1, 1), "SAME",
                                     dimension_numbers=dn)
    y = y + jax.lax.conv_general_dilated(x_nchw, w1, (1, 1), "VALID",
                                         dimension_numbers=dn)
    inv = 1.0 / jnp.sqrt(var + eps)
    return ((y - mean[None, :, None, None]) * inv[None, :, None, None]
            * gamma[None, :, None, None] + beta[None, :, None, None])


if __name__ == "__main__":
    key = jax.random.PRNGKey(0)
    k_x, k_w3, k_w1, k_g, k_b, k_m, k_v = jax.random.split(key, 7)

    N, Cin, Cout, H, W = 2, 4, 8, 16, 16

    x = jax.random.normal(k_x, (N, Cin, H, W), jnp.float32)
    w3 = jax.random.normal(k_w3, (Cout, Cin, 3, 3), jnp.float32) * 0.1   # conv3x3 weight
    w1 = jax.random.normal(k_w1, (Cout, Cin, 1, 1), jnp.float32) * 0.1   # parallel 1x1 weight
    gamma = jax.random.normal(k_g, (Cout,), jnp.float32) * 0.1 + 1.0     # BN weight
    beta = jax.random.normal(k_b, (Cout,), jnp.float32) * 0.1            # BN bias
    running_mean = jax.random.normal(k_m, (Cout,), jnp.float32) * 0.1    # BN running_mean
    running_var = jax.nn.softplus(jax.random.normal(k_v, (Cout,), jnp.float32)) + 0.5

    out = conv_task_forward(x, w3, w1, gamma, beta, running_mean, running_var)
    out = jax.block_until_ready(out)

    ref = _reference(x, w3, w1, gamma, beta, running_mean, running_var)
    max_err = float(jnp.max(jnp.abs(out - ref)))
    assert out.shape == (N, Cout, H, W), out.shape
    # Tolerance loosened vs. the pure-f32 version because inputs/weights feed
    # the MXU as bf16 (accumulation is f32); observed error is ~1e-2 worst case.
    assert jnp.allclose(out, ref, atol=5e-2, rtol=5e-2), max_err

    print("KERNEL_OK")
</pallas_src>

<mosaic_0001>
module attributes {stable_mosaic.version = 11 : i64} {
  func.func @conv_task_kernel(%arg0: i32, %arg1: memref<1x36x256xbf16, #tpu.memory_space<vmem>>, %arg2: memref<8x36xbf16, #tpu.memory_space<vmem>>, %arg3: memref<8x1xf32, #tpu.memory_space<vmem>>, %arg4: memref<1x8x256xf32, #tpu.memory_space<vmem>>) attributes {dimension_semantics = [#tpu.dimension_semantics<parallel>], iteration_bounds = array<i64: 2>, scalar_prefetch = 0 : i64, scratch_operands = 0 : i64, tpu.core_type = #tpu.core_type<tc>, window_params = [{transform_indices = @transform_0, window_bounds = array<i64: 1, 36, 256>}, {pipeline_mode = #tpu.pipeline_mode<synchronous>, transform_indices = @transform_1, window_bounds = array<i64: 8, 36>}, {pipeline_mode = #tpu.pipeline_mode<synchronous>, transform_indices = @transform_2, window_bounds = array<i64: 8, 1>}, {transform_indices = @transform_3, window_bounds = array<i64: 1, 8, 256>}]} {
    %c0 = arith.constant 0 : index
    %c0_0 = arith.constant 0 : index
    %0 = vector.load %arg2[%c0, %c0_0] : memref<8x36xbf16, #tpu.memory_space<vmem>>, vector<8x36xbf16>
    %c0_1 = arith.constant 0 : index
    %c0_2 = arith.constant 0 : index
    %c0_3 = arith.constant 0 : index
    %1 = vector.load %arg1[%c0_1, %c0_2, %c0_3] : memref<1x36x256xbf16, #tpu.memory_space<vmem>>, vector<1x36x256xbf16>
    %2 = vector.shape_cast %1 : vector<1x36x256xbf16> to vector<36x256xbf16>
    %cst = arith.constant dense<0.000000e+00> : vector<8x256xf32>
    %3 = tpu.matmul %0, %2, %cst {dimension_numbers = #tpu.dot_dimension_numbers<[1], [0], [0], [1], [0, 0, 1, 1], [], []>} : vector<8x36xbf16>, vector<36x256xbf16>, vector<8x256xf32> -> vector<8x256xf32>
    %c0_4 = arith.constant 0 : index
    %c0_5 = arith.constant 0 : index
    %4 = vector.load %arg3[%c0_4, %c0_5] : memref<8x1xf32, #tpu.memory_space<vmem>>, vector<8x1xf32>
    %5 = vector.broadcast %4 : vector<8x1xf32> to vector<8x256xf32>
    %6 = arith.addf %3, %5 : vector<8x256xf32>
    %c0_6 = arith.constant 0 : index
    %c0_7 = arith.constant 0 : index
    %c0_8 = arith.constant 0 : index
    %7 = vector.load %arg4[%c0_6, %c0_7, %c0_8] : memref<1x8x256xf32, #tpu.memory_space<vmem>>, vector<1x8x256xf32>
    %8 = vector.shape_cast %7 : vector<1x8x256xf32> to vector<8x256xf32>
    %9 = vector.shape_cast %6 : vector<8x256xf32> to vector<1x8x256xf32>
    tpu.vector_store %arg4[%c0_6, %c0_7, %c0_8], %9 {strides = array<i32>} : memref<1x8x256xf32, #tpu.memory_space<vmem>>, vector<1x8x256xf32>,
    return
  }
  func.func @transform_0(%arg0: i32) -> (i32, i32, i32) {
    %c0_i32 = arith.constant 0 : i32
    %c0_i32_0 = arith.constant 0 : i32
    %c0_i32_1 = arith.constant 0 : i32
    return %arg0, %c0_i32, %c0_i32_0 : i32, i32, i32
  }
  func.func @transform_1(%arg0: i32) -> (i32, i32) {
    %c0_i32 = arith.constant 0 : i32
    %c0_i32_0 = arith.constant 0 : i32
    %c0_i32_1 = arith.constant 0 : i32
    return %c0_i32, %c0_i32_0 : i32, i32
  }
  func.func @transform_2(%arg0: i32) -> (i32, i32) {
    %c0_i32 = arith.constant 0 : i32
    %c0_i32_0 = arith.constant 0 : i32
    %c0_i32_1 = arith.constant 0 : i32
    return %c0_i32, %c0_i32_0 : i32, i32
  }
  func.func @transform_3(%arg0: i32) -> (i32, i32, i32) {
    %c0_i32 = arith.constant 0 : i32
    %c0_i32_0 = arith.constant 0 : i32
    %c0_i32_1 = arith.constant 0 : i32
    return %arg0, %c0_i32, %c0_i32_0 : i32, i32, i32
  }
}

</mosaic_0001>

<bundles_post_ra>
// kernel: tpu_custom_call.1
= control target key start
LH: loop header
LB: loop body
LE: loop exit
PB: predicated region body
PF: predicated region fallthrough
CT: control target
= control target key end

     0   :  { %8 = vsyncpa [#allocation3], 0  ;;  %s594_s0 = inlined_call_operand.vmem [shape: bf16[2,36,256], index: 0, kind: input, shape index: {}]   ;;  %s595_s1 = inlined_call_operand.vmem [shape: bf16[8,36], index: 1, kind: input, shape index: {}]   ;;  %s596_s2 = inlined_call_operand.vmem [shape: f32[8,1], index: 2, kind: input, shape index: {}]   ;;  %s597_s3 = inlined_call_operand.hbm [shape: f32[2,8,256], index: 3, kind: output, shape index: {}]  }
   0x1   :  { %10 = vsyncpa [#allocation3 + $0x1], 0  ;;  %s489_s12 = smov 0   ;;  %s491_s13 = smov 0  }
   0x2   :  { %s493_s14 = smov 0   ;;  %s495_s15 = smov 0  }
   0x3 LB: > { %s510_s16 = sadd.s32 4294967295, %s465_s15   ;;  %s335_s17 = sadd.s32 4294967294, %s465_s15   ;;  %s465_s15 = sphi %s495_s15, %s603_s15   ;;  %s461_s14 = sphi %s493_s14, %s602_s14   ;;  %s457_s13 = sphi %s491_s13, %s601_s13   ;;  %s453_s12 = sphi %s489_s12, %s600_s12  }
   0x4   : > { %s514_s18 = sadd.s32 1, %s465_s15   ;;  %s91_s19 = sadd.s32 1, %s461_s14 }
   0x5   : > { %s88_s20 = ssub.s32 %s465_s15, %s514_s18  ;;  %p101_p0 = scmp.ne.s32.totalorder %s461_s14, %s457_s13 }
   0x6   : > { %p89_p1 = scmp.eq.s32.totalorder %s88_s20, 0  ;;  %p102_p2 = scmp.eq.s32.totalorder %s510_s16, 1 }
   0x7   : > { %p107_p3 = scmp.ne.s32.totalorder %s457_s13, %s453_s12  ;;  %p108_p4 = scmp.eq.s32.totalorder %s335_s17, 1 }
   0x8   : > { %s525_s21 = scalar_select %p89_p1, %s461_s14, %s91_s19  }
   0x9   : > { %p527_p5 = por %p102_p2, %p101_p0  ;;  %p531_p6 = por %p108_p4, %p107_p3 }
   0xa   : > { %p338_p7 = scmp.ge.s32.totalorder %s465_s15, 1  ;;  %p140_p8 = scmp.lt.s32.totalorder %s465_s15, 3 }
   0xc   : > { %p141_p9 = pnand %p338_p7, %p140_p8 }
   0xd   : > { %p164_p10 = scmp.lt.s32.totalorder (!%p141_p9), %s510_s16, 1  ;;  %s161_s6 = sand.u32 (!%p141_p9), 1, %s457_s13  }
   0xe   : > { %144 = sbr.rel (%p141_p9) target bundleno = 250 (0xfa), region = 32  ;;  %s339_s7 = sshll.u32 (!%p141_p9), %s161_s6, 4 }
   0xf   : > { %s354_s8 = sshll.u32 (!%p141_p9), %s510_s16, 8  ;;  %s163_s9 = scalar_lea.vmem (!%p141_p9), [#allocation2], %s339_s7 }
  0x10   : > { %s276_s10 = sshll.u32 (!%p141_p9), %s163_s9, 4  ;;  %s553_s19 = scalar_lea.hbm (!%p141_p9), %s597_s3, %s354_s8  ;;  %s555_s10 = int_to_ptr.vmem [resolvable:$true] %s276_s10 }
  0x11   : > { %s405_s20 = scalar_lea.vmem (!%p141_p9), %s555_s10, 256  ;;  %s468_s24 = smov (!%p141_p9), [#allocation2]  }
  0x12   : > { %p406_p11 = scmp.ne.s32.totalorder (!%p141_p9), %s555_s10, %s405_s20  ;;  %s409_s25 = sshll.u32 (!%p141_p9), %s468_s24, 4  ;;  %s410_s25 = int_to_ptr.vmem [resolvable:$false] %s409_s25 }
  0x13   : > { %v467_v0 = vmov 0   ;;  %v176_v1 = vld [vmem:[%s596_s2] sm:$0xff]  ;;  %s165_s26 = scalar_select %p164_p10, %s510_s16, 1  ;;  %vm211_vm0 = vcmask 1041408   ;;  %vm207_vm1 = vcmask 293888  }
  0x14   : > { %250 = vmatprep.mubr.bf16.mxu0 %v467_v0  ;;  %396 = vset.pattern.permute.xlu0 %v467_v0  ;;  %v170_v10 = vld [vmem:[%s595_s1] sm:$0xf]  ;;  %s262_s16 = scalar_lea.sflag [#allocation3], %s161_s6  ;;  %p407_p12 = pnand %p406_p11, %p527_p5 }
  0x15   : > { %179 = vperm.xlu0 %396, %v176_v1   ;;  %s355_s27 = smul.u32 40, %s165_s26  ;;  %s411_s26 = scalar_lea.vmem %s410_s25, 512 }
  0x16   : > { %p408_p13 = pneg %p407_p12  ;;  %p412_p0 = scmp.lt.s32.totalorder %s555_s10, %s410_s25 }
  0x17   : > { %s168_s30 = scalar_lea.vmem %s594_s0, %s355_s27  ;;  %p413_p1 = scmp.lt.s32.totalorder %s411_s26, %s405_s20 }
  0x18   : > { %v175_v2 = vld [vmem:[%s168_s30 + $0x20] sm:$0x33]  ;;  %v399_v5 = vld [vmem:[%s168_s30 + $0x14] ss:$8 sps:$4 sm:$0xff]   ;;  %v401_v7 = vld [vmem:[%s168_s30 + $0x10] ss:$8 sps:$4 sm:$0xff]  }
  0x19   : > { %v346_v3 = vcombine.high %v175_v2, %v175_v2  ;;  %v345_v4 = vcombine.low %v175_v2, %v175_v2  ;;  %v402_v8 = vld [vmem:[%s168_s30 + $0x4] ss:$8 sps:$4 sm:$0xff]   ;;  %v404_v9 = vld [vmem:[%s168_s30] ss:$8 sps:$4 sm:$0xff]   ;;  %p414_p2 = por %p413_p1, %p412_p0 }
  0x1b   : > { %347 = vmatprep.subr.msk.bf16.mxu0 %vm211_vm0, %v346_v3  ;;  %v213_v6 = vsel %vm211_vm0, %v345_v4, 0  ;;  %p415_p3 = pnand %p414_p2, %p408_p13 }
  0x1c   : > { %229 = vmatpush1.bf16.msra.mxu0 %v213_v6 }
  0x1d   : > { %230 = vmatprep.subr.bf16.mxu0 %v399_v5 }
  0x20   : > { %231 = vmatpush1.bf16.msra.mxu0 %v401_v7 }
  0x21   : > { %232 = vmatprep.subr.bf16.mxu0 %v402_v8 }
  0x24   : > { %233 = vmatpush1.bf16.msra.mxu0 %v404_v9 }
  0x27   : > { %348 = vmatmul.mubr.msk.bf16.vlgmr.msra.gmra.mxu0 %vm207_vm1, %v170_v10 }
  0x90   : > { %v180_v11 = vpop.permute.xlu0 %179 }
  0xe7   : > { %v252_v12 = vpop.f32.mrf.mxu0 }
  0xe8   : > { %v253_v13 = vadd.f32 %v252_v12, %v180_v11 }
  0xe9   : > { %v254_v14 = vpop.f32.mrf.mxu0 }
  0xea   : > { %259 = vst [vmem:[%s163_s9] sm:$0xff] %v253_v13  ;;  %v255_v15 = vadd.f32 %v254_v14, %v180_v11 }
  0xeb   : > { %v256_v16 = vpop.f32.mrf.mxu0 }
  0xec   : > { %260 = vst [vmem:[%s163_s9 + $0x8] sm:$0xff] %v255_v15 }
  0xed   : > { %v257_v17 = vpop.f32.mrf.mxu0 }
  0xee   : > { %418 = shalt.err (!%p415_p3)
}
  0xef   : > { %s419_s27 = scalar_lea.hbm %s553_s19, 256  ;;  %s423_s30 = scalar_lea.hbm %s597_s3, 512 }
  0xf0   : > { %p420_p4 = scmp.ne.s32.totalorder %s553_s19, %s419_s27  ;;  %p424_p9 = scmp.lt.s32.totalorder %s553_s19, %s597_s3 }
  0xf1   : > { %p425_p10 = scmp.lt.s32.totalorder %s423_s30, %s419_s27 }
  0xf2   : > { %p421_p7 = pnand %p420_p4, %p527_p5 }
  0xf3   : > { %p426_p11 = por %p425_p10, %p424_p9 }
  0xf4   : > { %p422_p8 = pneg %p421_p7 }
  0xf6   : > { %p427_p12 = pnand %p426_p11, %p422_p8 }
  0xf8   : > { %430 = shalt.err (!%p427_p12)
}
  0xf9   : > { %356 = dma.vmem_to_hbm [thread:$0]  (%p527_p5), %s555_s10, 256, %s553_s19, %s262_s16  }
  0xfa PF: > { %p362_p13 = scmp.ge.s32.totalorder %s465_s15, 2  ;;  %s288_s6 = sand.u32 1, %s453_s12  }
  0xfb   : > { %s289_s7 = scalar_lea.sflag [#allocation3], %s288_s6 }
  0xfc   : > { %p359_p0 = pnand %p362_p13, %p531_p6 }
  0xfe   : > { %p360_p1 = pneg %p359_p0 }
 0x100   : > { %448 = dma.done.wait (%p360_p1), %s289_s7, 256  }
 0x101   : > { %450 = vsyncadd (%p360_p1), %s289_s7, 4294967040  ;;  %p13_p2 = scmp.ge.s32.totalorder %s514_s18, 4   ;;  %s600_s12 = smov %s457_s13 }
 0x102   : > { %s601_s13 = smov %s461_s14  ;;  %s602_s14 = smov %s525_s21 }
 0x103   : > { %s603_s15 = smov %s514_s18  ;;  %15 = sbr.rel (!%p13_p2) target bundleno = 3 (0x3), region = 67 }
 0x108   :  { %294 = vsyncpa [#allocation3], 1 }
 0x109   :  { %296 = vsyncpa [#allocation3 + $0x1], 1 }

</bundles_post_ra>
